<compile_context>
chip_gen: v6e
topology: v6e:2x2x1
jax: 0.10.0
libtpu: 0.0.40
codegen_flags: <defaults>
</compile_context>

<pallas_src>
import functools
import math

import jax
import jax.numpy as jnp
from jax import lax
from jax.experimental import pallas as pl
from jax.experimental.pallas import tpu as pltpu


# Contract the last dim of both operands (activation . activation^T), e.g. q @ k^T.
_CONTRACT_LAST = (((1,), (1,)), ((), ()))


# ----------------------------------------------------------------- helpers ---

def _vmem_capacity_bytes():
    """Physical VMEM per core; falls back to the v7x 64 MiB floor."""
    try:
        return int(getattr(pltpu.get_tpu_info(), "vmem_capacity_bytes", 64 << 20))
    except Exception:
        return 64 << 20


def _compiler_params(block_bytes, extra_bytes):
    """dimension_semantics + a vmem limit derived from the actual block footprint."""
    cap = _vmem_capacity_bytes()
    need = 2 * block_bytes + extra_bytes + (8 << 20)        # double-buffered blocks + headroom
    limit = int(min(max(need, 32 << 20), (cap * 3) // 4))   # never above 3/4 of physical VMEM
    return pltpu.CompilerParams(dimension_semantics=("parallel",),
                                vmem_limit_bytes=limit)


def _layernorm_f32(x, g, b):
    mean = jnp.mean(x, axis=-1, keepdims=True)
    var = jnp.mean((x - mean) ** 2, axis=-1, keepdims=True)   # biased, like torch
    return (x - mean) * lax.rsqrt(var + 1e-5) * g + b


# ----------------------------------------------------------------- kernels ---

def _attn_sublayer_kernel(*refs, num_heads, cross):
    """Fused pre-norm MHA sublayer for one batch element: out = x + MHA(LN(x), kv).

    Weights arrive pre-transposed to (in, out) layout and in bf16; MXU matmuls are
    bf16 x bf16 -> f32 accumulation.  LN / softmax / residual math stays in f32.
    """
    if cross:
        (x_ref, kv_ref, g_ref, b_ref,
         wq_ref, bq_ref, wk_ref, bk_ref, wv_ref, bv_ref,
         wo_ref, bo_ref, o_ref, ctx_ref) = refs
    else:
        (x_ref, g_ref, b_ref,
         wq_ref, bq_ref, wk_ref, bk_ref, wv_ref, bv_ref,
         wo_ref, bo_ref, o_ref, ctx_ref) = refs
        kv_ref = None

    x = x_ref[...].astype(jnp.float32)                          # (Sq, D) residual input
    xn = _layernorm_f32(x, g_ref[...], b_ref[...])              # pre-norm prologue (f32)

    # self-attn: K/V from the normed query stream; cross-attn: raw encoder output.
    xn_b = xn.astype(jnp.bfloat16)
    kvn_b = xn_b if kv_ref is None else kv_ref[...].astype(jnp.bfloat16)   # (Skv, D)

    # Projections: x(bf16) @ W(in,out)(bf16) -> f32 accumulate, f32 bias add.
    q = jnp.dot(xn_b, wq_ref[...], preferred_element_type=jnp.float32) + bq_ref[...]
    k = jnp.dot(kvn_b, wk_ref[...], preferred_element_type=jnp.float32) + bk_ref[...]
    v = jnp.dot(kvn_b, wv_ref[...], preferred_element_type=jnp.float32) + bv_ref[...]

    d_model = q.shape[-1]
    dk = d_model // num_heads
    q = q * (1.0 / math.sqrt(dk))          # fold 1/sqrt(dk) into q: O(Sq*D), not O(Sq*Skv)

    q_b = q.astype(jnp.bfloat16)
    k_b = k.astype(jnp.bfloat16)
    v_b = v.astype(jnp.bfloat16)

    # TODO(synk): attention mask support not wired (masks=None path only).
    # Static unroll over heads (small H); each head writes its ctx into the VMEM
    # scratch at its lane offset so the output projection is ONE full-K matmul.
    for h in range(num_heads):
        lo, hi = h * dk, (h + 1) * dk
        s = lax.dot_general(q_b[:, lo:hi], k_b[:, lo:hi], _CONTRACT_LAST,
                            preferred_element_type=jnp.float32)             # (Sq, Skv)
        s = s - jnp.max(s, axis=-1, keepdims=True)
        p = jnp.exp(s)                                                      # f32 softmax
        p = p * pl.reciprocal(jnp.sum(p, axis=-1, keepdims=True), approx=True)
        ctx = jnp.dot(p.astype(jnp.bfloat16), v_b[:, lo:hi],
                      preferred_element_type=jnp.float32)                   # (Sq, dk)
        ctx_ref[:, lo:hi] = ctx

    # One (Sq,D) x (D,D) output projection (no per-head small-K matmuls).
    out = jnp.dot(ctx_ref[...].astype(jnp.bfloat16), wo_ref[...],
                  preferred_element_type=jnp.float32) + bo_ref[...]
    o_ref[...] = (x + out).astype(o_ref.dtype)                  # residual add fused in store


def _ffn_sublayer_kernel(x_ref, g_ref, b_ref, w1_ref, b1_ref, w2_ref, b2_ref, o_ref):
    """Fused pre-norm FFN sublayer on a row tile: out = x + W2.relu(W1.LN(x))."""
    x = x_ref[...].astype(jnp.float32)                          # (tm, D)
    xn = _layernorm_f32(x, g_ref[...], b_ref[...])
    h = jnp.dot(xn.astype(jnp.bfloat16), w1_ref[...],
                preferred_element_type=jnp.float32) + b1_ref[...]           # (tm, F)
    h = jnp.maximum(h, 0.0)
    y = jnp.dot(h.astype(jnp.bfloat16), w2_ref[...],
                preferred_element_type=jnp.float32) + b2_ref[...]           # (tm, D)
    o_ref[...] = (x + y).astype(o_ref.dtype)


# ---------------------------------------------------------------- wrappers ---

def attention_sublayer(x, kv, gamma, beta, p, num_heads, cross):
    """x: (B, Sq, D) residual stream; kv: (B, Skv, D) encoder output or None (self-attn)."""
    B, Sq, D = x.shape
    Skv = kv.shape[1] if cross else Sq
    kernel = functools.partial(_attn_sublayer_kernel, num_heads=num_heads, cross=cross)

    # Pre-transpose weights to (in, out) and cast to bf16 OUTSIDE the kernel:
    # one-time copy amortized over all grid steps, no in-kernel transposes,
    # bf16 MXU operands, half the HBM DMA bytes and VMEM weight footprint.
    bf = jnp.bfloat16
    wq, wk, wv, wo = (p["wq"].T.astype(bf), p["wk"].T.astype(bf),
                      p["wv"].T.astype(bf), p["wo"].T.astype(bf))

    w_spec = pl.BlockSpec((D, D), lambda b: (0, 0))
    v_spec = pl.BlockSpec((1, D), lambda b: (0, 0))
    x_spec = pl.BlockSpec((None, Sq, D), lambda b: (b, 0, 0))   # squeezed batch dim

    in_specs = [x_spec]
    operands = [x]
    if cross:
        in_specs.append(pl.BlockSpec((None, Skv, D), lambda b: (b, 0, 0)))
        operands.append(kv)
    in_specs += [v_spec, v_spec,                 # gamma, beta
                 w_spec, v_spec,                 # wq, bq
                 w_spec, v_spec,                 # wk, bk
                 w_spec, v_spec,                 # wv, bv
                 w_spec, v_spec]                 # wo, bo
    operands += [gamma.reshape(1, D), beta.reshape(1, D),
                 wq, p["bq"].reshape(1, D),
                 wk, p["bk"].reshape(1, D),
                 wv, p["bv"].reshape(1, D),
                 wo, p["bo"].reshape(1, D)]

    block_bytes = (4 * D * D * 2                 # bf16 weights
                   + 6 * D * 4                   # biases + ln params (f32)
                   + (Sq * D + (Skv * D if cross else 0) + Sq * D) * 4)   # x (+kv) + out
    extra_bytes = (Sq * D * 4                    # ctx scratch
                   + 3 * max(Sq, Skv) * D * 4    # q/k/v intermediates
                   + 2 * Sq * Skv * 4)           # scores + probs

    return pl.pallas_call(
        kernel,
        out_shape=jax.ShapeDtypeStruct((B, Sq, D), x.dtype),
        grid=(B,),
        in_specs=in_specs,
        out_specs=x_spec,
        scratch_shapes=[pltpu.VMEM((Sq, D), jnp.float32)],   # per-head ctx landing pad
        compiler_params=_compiler_params(block_bytes, extra_bytes),
    )(*operands)


def _pick_row_tile(M, D, F):
    """Largest row tile (multiple of 8, dividing M) that fits the per-gen VMEM budget."""
    budget = _vmem_capacity_bytes() // 2                  # leave half for compiler scratch
    weight_bytes = 2 * (2 * D * F) * 2                    # bf16 w1+w2, double-buffered
    avail = max(budget - weight_bytes, 2 << 20)
    per_row = (2 * 2 * D * 4) + (F * 4) + (2 * D * 4)     # in/out tiles (x2 buf) + hidden + y
    cap_rows = max(8, min(1024, (avail // per_row) // 8 * 8))
    if M <= cap_rows:
        return M
    for tm in range(cap_rows, 0, -8):
        if M % tm == 0:
            return tm
    return M   # TODO(synk): pad ragged M to a multiple of 8 instead of one full block


def ffn_sublayer(x, gamma, beta, w1, b1, w2, b2):
    B, S, D = x.shape
    M = B * S
    F = w1.shape[0]
    x2d = x.reshape(M, D)                       # contiguous view, no data movement
    tm = _pick_row_tile(M, D, F)

    bf = jnp.bfloat16
    w1t = w1.T.astype(bf)                       # (D, F), (in, out) layout
    w2t = w2.T.astype(bf)                       # (F, D), (in, out) layout

    block_bytes = 2 * tm * D * 4 + 2 * D * F * 2 + (F + 3 * D) * 4
    extra_bytes = tm * F * 4 + 2 * tm * D * 4

    out = pl.pallas_call(
        _ffn_sublayer_kernel,
        out_shape=jax.ShapeDtypeStruct((M, D), x.dtype),
        grid=(M // tm,),
        in_specs=[pl.BlockSpec((tm, D), lambda i: (i, 0)),
                  pl.BlockSpec((1, D), lambda i: (0, 0)),
                  pl.BlockSpec((1, D), lambda i: (0, 0)),
                  pl.BlockSpec((D, F), lambda i: (0, 0)),   # w1^T, bf16
                  pl.BlockSpec((1, F), lambda i: (0, 0)),
                  pl.BlockSpec((F, D), lambda i: (0, 0)),   # w2^T, bf16
                  pl.BlockSpec((1, D), lambda i: (0, 0))],
        out_specs=pl.BlockSpec((tm, D), lambda i: (i, 0)),
        compiler_params=_compiler_params(block_bytes, extra_bytes),
    )(x2d, gamma.reshape(1, D), beta.reshape(1, D),
      w1t, b1.reshape(1, F), w2t, b2.reshape(1, D))
    return out.reshape(B, S, D)


def decoder_layer(x, enc_output, params, num_heads):
    # 3 fused pallas_calls per layer.
    x = attention_sublayer(x, None, params["ln1_g"], params["ln1_b"],
                           params["self_attn"], num_heads, cross=False)
    x = attention_sublayer(x, enc_output, params["ln2_g"], params["ln2_b"],
                           params["enc_dec_attn"], num_heads, cross=True)
    x = ffn_sublayer(x, params["ln3_g"], params["ln3_b"],
                     params["ff_w1"], params["ff_b1"],
                     params["ff_w2"], params["ff_b2"])
    return x


# --------------------------------------------------------------- reference ---

def _ref_layernorm(x, g, b):
    m = jnp.mean(x, axis=-1, keepdims=True)
    v = jnp.mean((x - m) ** 2, axis=-1, keepdims=True)
    return (x - m) / jnp.sqrt(v + 1e-5) * g + b


def _ref_mha(xq, xkv, p, H):
    B, Sq, D = xq.shape
    Skv = xkv.shape[1]
    dk = D // H
    q = (xq @ p["wq"].T + p["bq"]).reshape(B, Sq, H, dk).transpose(0, 2, 1, 3)
    k = (xkv @ p["wk"].T + p["bk"]).reshape(B, Skv, H, dk).transpose(0, 2, 1, 3)
    v = (xkv @ p["wv"].T + p["bv"]).reshape(B, Skv, H, dk).transpose(0, 2, 1, 3)
    s = jnp.einsum("bhqd,bhkd->bhqk", q, k) / math.sqrt(dk)
    a = jax.nn.softmax(s, axis=-1)
    c = jnp.einsum("bhqk,bhkd->bhqd", a, v).transpose(0, 2, 1, 3).reshape(B, Sq, D)
    return c @ p["wo"].T + p["bo"]


def _ref_decoder(x, enc, p, H):
    x2 = _ref_layernorm(x, p["ln1_g"], p["ln1_b"])
    x = x + _ref_mha(x2, x2, p["self_attn"], H)
    x2 = _ref_layernorm(x, p["ln2_g"], p["ln2_b"])
    x = x + _ref_mha(x2, enc, p["enc_dec_attn"], H)
    x2 = _ref_layernorm(x, p["ln3_g"], p["ln3_b"])
    h = jnp.maximum(x2 @ p["ff_w1"].T + p["ff_b1"], 0.0)
    return x + (h @ p["ff_w2"].T + p["ff_b2"])


# -------------------------------------------------------------------- main ---

def _init_linear(key, out_dim, in_dim):
    bound = 1.0 / math.sqrt(in_dim)
    kw, kb = jax.random.split(key)
    w = jax.random.uniform(kw, (out_dim, in_dim), jnp.float32, -bound, bound)
    b = jax.random.uniform(kb, (out_dim,), jnp.float32, -bound, bound)
    return w, b


def _init_mha(key, d_model):
    ks = jax.random.split(key, 4)
    p = {}
    for name, k in zip(("q", "k", "v", "o"), ks):
        w, b = _init_linear(k, d_model, d_model)
        p["w" + name] = w
        p["b" + name] = b
    return p


if __name__ == "__main__":
    B, S, D, H, F = 2, 8, 32, 4, 64

    root = jax.random.PRNGKey(0)
    keys = jax.random.split(root, 8)

    params = {
        "ln1_g": jnp.ones((D,), jnp.float32), "ln1_b": jnp.zeros((D,), jnp.float32),
        "ln2_g": jnp.ones((D,), jnp.float32), "ln2_b": jnp.zeros((D,), jnp.float32),
        "ln3_g": jnp.ones((D,), jnp.float32), "ln3_b": jnp.zeros((D,), jnp.float32),
        "self_attn": _init_mha(keys[0], D),
        "enc_dec_attn": _init_mha(keys[1], D),
    }
    params["ff_w1"], params["ff_b1"] = _init_linear(keys[2], F, D)
    params["ff_w2"], params["ff_b2"] = _init_linear(keys[3], D, F)

    x = jax.random.normal(keys[4], (B, S, D), jnp.float32)
    enc_output = jax.random.normal(keys[5], (B, S, D), jnp.float32)

    out = decoder_layer(x, enc_output, params, H)
    out = jax.block_until_ready(out)

    ref = _ref_decoder(x, enc_output, params, H)
    assert out.shape == (B, S, D)
    # bf16 MXU operands + approx-reciprocal softmax vs an all-f32 reference:
    # tolerance is loosened accordingly (per review guidance).
    max_err = jnp.max(jnp.abs(out - ref))
    assert jnp.allclose(out, ref, atol=5e-2, rtol=5e-2), f"max err {max_err}"

    print("KERNEL_OK")
</pallas_src>

<mosaic_0001>
module attributes {stable_mosaic.version = 11 : i64} {
  func.func @_attn_sublayer_kernel(%arg0: i32, %arg1: memref<1x8x32xf32, #tpu.memory_space<vmem>>, %arg2: memref<1x32xf32, #tpu.memory_space<vmem>>, %arg3: memref<1x32xf32, #tpu.memory_space<vmem>>, %arg4: memref<32x32xbf16, #tpu.memory_space<vmem>>, %arg5: memref<1x32xf32, #tpu.memory_space<vmem>>, %arg6: memref<32x32xbf16, #tpu.memory_space<vmem>>, %arg7: memref<1x32xf32, #tpu.memory_space<vmem>>, %arg8: memref<32x32xbf16, #tpu.memory_space<vmem>>, %arg9: memref<1x32xf32, #tpu.memory_space<vmem>>, %arg10: memref<32x32xbf16, #tpu.memory_space<vmem>>, %arg11: memref<1x32xf32, #tpu.memory_space<vmem>>, %arg12: memref<1x8x32xf32, #tpu.memory_space<vmem>>, %arg13: memref<8x32xf32, #tpu.memory_space<vmem>>) attributes {dimension_semantics = [#tpu.dimension_semantics<parallel>], iteration_bounds = array<i64: 2>, scalar_prefetch = 0 : i64, scratch_operands = 1 : i64, tpu.core_type = #tpu.core_type<tc>, window_params = [{transform_indices = @transform_0, window_bounds = array<i64: 1, 8, 32>}, {pipeline_mode = #tpu.pipeline_mode<synchronous>, transform_indices = @transform_1, window_bounds = array<i64: 1, 32>}, {pipeline_mode = #tpu.pipeline_mode<synchronous>, transform_indices = @transform_2, window_bounds = array<i64: 1, 32>}, {pipeline_mode = #tpu.pipeline_mode<synchronous>, transform_indices = @transform_3, window_bounds = array<i64: 32, 32>}, {pipeline_mode = #tpu.pipeline_mode<synchronous>, transform_indices = @transform_4, window_bounds = array<i64: 1, 32>}, {pipeline_mode = #tpu.pipeline_mode<synchronous>, transform_indices = @transform_5, window_bounds = array<i64: 32, 32>}, {pipeline_mode = #tpu.pipeline_mode<synchronous>, transform_indices = @transform_6, window_bounds = array<i64: 1, 32>}, {pipeline_mode = #tpu.pipeline_mode<synchronous>, transform_indices = @transform_7, window_bounds = array<i64: 32, 32>}, {pipeline_mode = #tpu.pipeline_mode<synchronous>, transform_indices = @transform_8, window_bounds = array<i64: 1, 32>}, {pipeline_mode = #tpu.pipeline_mode<synchronous>, transform_indices = @transform_9, window_bounds = array<i64: 32, 32>}, {pipeline_mode = #tpu.pipeline_mode<synchronous>, transform_indices = @transform_10, window_bounds = array<i64: 1, 32>}, {transform_indices = @transform_11, window_bounds = array<i64: 1, 8, 32>}]} {
    %c0 = arith.constant 0 : index
    %c0_0 = arith.constant 0 : index
    %c0_1 = arith.constant 0 : index
    %0 = vector.load %arg1[%c0, %c0_0, %c0_1] : memref<1x8x32xf32, #tpu.memory_space<vmem>>, vector<1x8x32xf32>
    %1 = vector.shape_cast %0 : vector<1x8x32xf32> to vector<8x32xf32>
    %c0_2 = arith.constant 0 : index
    %c0_3 = arith.constant 0 : index
    %2 = vector.load %arg2[%c0_2, %c0_3] : memref<1x32xf32, #tpu.memory_space<vmem>>, vector<1x32xf32>
    %c0_4 = arith.constant 0 : index
    %c0_5 = arith.constant 0 : index
    %3 = vector.load %arg3[%c0_4, %c0_5] : memref<1x32xf32, #tpu.memory_space<vmem>>, vector<1x32xf32>
    %cst = arith.constant dense<0.000000e+00> : vector<8xf32>
    %4 = vector.multi_reduction <add>, %1, %cst [1] : vector<8x32xf32> to vector<8xf32>
    %5 = vector.shape_cast %4 : vector<8xf32> to vector<8x1xf32>
    %cst_6 = arith.constant 3.200000e+01 : f32
    %6 = vector.broadcast %cst_6 : f32 to vector<8x1xf32>
    %7 = arith.divf %5, %6 : vector<8x1xf32>
    %8 = vector.broadcast %7 : vector<8x1xf32> to vector<8x32xf32>
    %9 = arith.subf %1, %8 : vector<8x32xf32>
    %10 = arith.mulf %9, %9 : vector<8x32xf32>
    %cst_7 = arith.constant dense<0.000000e+00> : vector<8xf32>
    %11 = vector.multi_reduction <add>, %10, %cst_7 [1] : vector<8x32xf32> to vector<8xf32>
    %12 = vector.shape_cast %11 : vector<8xf32> to vector<8x1xf32>
    %cst_8 = arith.constant 3.200000e+01 : f32
    %13 = vector.broadcast %cst_8 : f32 to vector<8x1xf32>
    %14 = arith.divf %12, %13 : vector<8x1xf32>
    %15 = vector.broadcast %7 : vector<8x1xf32> to vector<8x32xf32>
    %16 = arith.subf %1, %15 : vector<8x32xf32>
    %cst_9 = arith.constant 9.99999974E-6 : f32
    %17 = vector.broadcast %cst_9 : f32 to vector<8x1xf32>
    %18 = arith.addf %14, %17 : vector<8x1xf32>
    %19 = math.rsqrt %18 : vector<8x1xf32>
    %20 = vector.broadcast %19 : vector<8x1xf32> to vector<8x32xf32>
    %21 = arith.mulf %16, %20 : vector<8x32xf32>
    %22 = vector.broadcast %2 : vector<1x32xf32> to vector<8x32xf32>
    %23 = arith.mulf %21, %22 : vector<8x32xf32>
    %24 = vector.broadcast %3 : vector<1x32xf32> to vector<8x32xf32>
    %25 = arith.addf %23, %24 : vector<8x32xf32>
    %26 = arith.truncf %25 : vector<8x32xf32> to vector<8x32xbf16>
    %c0_10 = arith.constant 0 : index
    %c0_11 = arith.constant 0 : index
    %27 = vector.load %arg4[%c0_10, %c0_11] : memref<32x32xbf16, #tpu.memory_space<vmem>>, vector<32x32xbf16>
    %cst_12 = arith.constant dense<0.000000e+00> : vector<8x32xf32>
    %28 = tpu.matmul %26, %27, %cst_12 {dimension_numbers = #tpu.dot_dimension_numbers<[1], [0], [0], [1], [0, 0, 1, 1], [], []>} : vector<8x32xbf16>, vector<32x32xbf16>, vector<8x32xf32> -> vector<8x32xf32>
    %c0_13 = arith.constant 0 : index
    %c0_14 = arith.constant 0 : index
    %29 = vector.load %arg5[%c0_13, %c0_14] : memref<1x32xf32, #tpu.memory_space<vmem>>, vector<1x32xf32>
    %30 = vector.broadcast %29 : vector<1x32xf32> to vector<8x32xf32>
    %31 = arith.addf %28, %30 : vector<8x32xf32>
    %c0_15 = arith.constant 0 : index
    %c0_16 = arith.constant 0 : index
    %32 = vector.load %arg6[%c0_15, %c0_16] : memref<32x32xbf16, #tpu.memory_space<vmem>>, vector<32x32xbf16>
    %cst_17 = arith.constant dense<0.000000e+00> : vector<8x32xf32>
    %33 = tpu.matmul %26, %32, %cst_17 {dimension_numbers = #tpu.dot_dimension_numbers<[1], [0], [0], [1], [0, 0, 1, 1], [], []>} : vector<8x32xbf16>, vector<32x32xbf16>, vector<8x32xf32> -> vector<8x32xf32>
    %c0_18 = arith.constant 0 : index
    %c0_19 = arith.constant 0 : index
    %34 = vector.load %arg7[%c0_18, %c0_19] : memref<1x32xf32, #tpu.memory_space<vmem>>, vector<1x32xf32>
    %35 = vector.broadcast %34 : vector<1x32xf32> to vector<8x32xf32>
    %36 = arith.addf %33, %35 : vector<8x32xf32>
    %c0_20 = arith.constant 0 : index
    %c0_21 = arith.constant 0 : index
    %37 = vector.load %arg8[%c0_20, %c0_21] : memref<32x32xbf16, #tpu.memory_space<vmem>>, vector<32x32xbf16>
    %cst_22 = arith.constant dense<0.000000e+00> : vector<8x32xf32>
    %38 = tpu.matmul %26, %37, %cst_22 {dimension_numbers = #tpu.dot_dimension_numbers<[1], [0], [0], [1], [0, 0, 1, 1], [], []>} : vector<8x32xbf16>, vector<32x32xbf16>, vector<8x32xf32> -> vector<8x32xf32>
    %c0_23 = arith.constant 0 : index
    %c0_24 = arith.constant 0 : index
    %39 = vector.load %arg9[%c0_23, %c0_24] : memref<1x32xf32, #tpu.memory_space<vmem>>, vector<1x32xf32>
    %40 = vector.broadcast %39 : vector<1x32xf32> to vector<8x32xf32>
    %41 = arith.addf %38, %40 : vector<8x32xf32>
    %cst_25 = arith.constant 0.353553385 : f32
    %42 = vector.broadcast %cst_25 : f32 to vector<8x32xf32>
    %43 = arith.mulf %31, %42 : vector<8x32xf32>
    %44 = arith.truncf %43 : vector<8x32xf32> to vector<8x32xbf16>
    %45 = arith.truncf %36 : vector<8x32xf32> to vector<8x32xbf16>
    %46 = arith.truncf %41 : vector<8x32xf32> to vector<8x32xbf16>
    %47 = vector.extract_strided_slice %44 {offsets = [0, 0], sizes = [8, 8], strides = [1, 1]} : vector<8x32xbf16> to vector<8x8xbf16>
    %48 = vector.extract_strided_slice %45 {offsets = [0, 0], sizes = [8, 8], strides = [1, 1]} : vector<8x32xbf16> to vector<8x8xbf16>
    %cst_26 = arith.constant dense<0.000000e+00> : vector<8x8xf32>
    %49 = tpu.matmul %47, %48, %cst_26 {dimension_numbers = #tpu.dot_dimension_numbers<[1], [1], [0], [0], [0, 0, 1, 0], [], []>} : vector<8x8xbf16>, vector<8x8xbf16>, vector<8x8xf32> -> vector<8x8xf32>
    %cst_27 = arith.constant dense<0xFF800000> : vector<8xf32>
    %50 = vector.multi_reduction <maximumf>, %49, %cst_27 [1] : vector<8x8xf32> to vector<8xf32>
    %51 = vector.shape_cast %50 : vector<8xf32> to vector<8x1xf32>
    %52 = vector.broadcast %51 : vector<8x1xf32> to vector<8x8xf32>
    %53 = arith.subf %49, %52 : vector<8x8xf32>
    %54 = math.exp %53 : vector<8x8xf32>
    %cst_28 = arith.constant dense<0.000000e+00> : vector<8xf32>
    %55 = vector.multi_reduction <add>, %54, %cst_28 [1] : vector<8x8xf32> to vector<8xf32>
    %56 = vector.shape_cast %55 : vector<8xf32> to vector<8x1xf32>
    %57 = tpu.reciprocal %56 {approx = true} : vector<8x1xf32> -> vector<8x1xf32>
    %58 = vector.broadcast %57 : vector<8x1xf32> to vector<8x8xf32>
    %59 = arith.mulf %54, %58 : vector<8x8xf32>
    %60 = arith.truncf %59 : vector<8x8xf32> to vector<8x8xbf16>
    %61 = vector.extract_strided_slice %46 {offsets = [0, 0], sizes = [8, 8], strides = [1, 1]} : vector<8x32xbf16> to vector<8x8xbf16>
    %cst_29 = arith.constant dense<0.000000e+00> : vector<8x8xf32>
    %62 = tpu.matmul %60, %61, %cst_29 {dimension_numbers = #tpu.dot_dimension_numbers<[1], [0], [0], [1], [0, 0, 1, 1], [], []>} : vector<8x8xbf16>, vector<8x8xbf16>, vector<8x8xf32> -> vector<8x8xf32>
    %c0_30 = arith.constant 0 : index
    %c0_31 = arith.constant 0 : index
    %63 = vector.load %arg13[%c0_30, %c0_31] : memref<8x32xf32, #tpu.memory_space<vmem>>, vector<8x8xf32>
    tpu.vector_store %arg13[%c0_30, %c0_31], %62 {strides = array<i32>} : memref<8x32xf32, #tpu.memory_space<vmem>>, vector<8x8xf32>,
    %64 = vector.extract_strided_slice %44 {offsets = [0, 8], sizes = [8, 8], strides = [1, 1]} : vector<8x32xbf16> to vector<8x8xbf16>
    %65 = vector.extract_strided_slice %45 {offsets = [0, 8], sizes = [8, 8], strides = [1, 1]} : vector<8x32xbf16> to vector<8x8xbf16>
    %cst_32 = arith.constant dense<0.000000e+00> : vector<8x8xf32>
    %66 = tpu.matmul %64, %65, %cst_32 {dimension_numbers = #tpu.dot_dimension_numbers<[1], [1], [0], [0], [0, 0, 1, 0], [], []>} : vector<8x8xbf16>, vector<8x8xbf16>, vector<8x8xf32> -> vector<8x8xf32>
    %cst_33 = arith.constant dense<0xFF800000> : vector<8xf32>
    %67 = vector.multi_reduction <maximumf>, %66, %cst_33 [1] : vector<8x8xf32> to vector<8xf32>
    %68 = vector.shape_cast %67 : vector<8xf32> to vector<8x1xf32>
    %69 = vector.broadcast %68 : vector<8x1xf32> to vector<8x8xf32>
    %70 = arith.subf %66, %69 : vector<8x8xf32>
    %71 = math.exp %70 : vector<8x8xf32>
    %cst_34 = arith.constant dense<0.000000e+00> : vector<8xf32>
    %72 = vector.multi_reduction <add>, %71, %cst_34 [1] : vector<8x8xf32> to vector<8xf32>
    %73 = vector.shape_cast %72 : vector<8xf32> to vector<8x1xf32>
    %74 = tpu.reciprocal %73 {approx = true} : vector<8x1xf32> -> vector<8x1xf32>
    %75 = vector.broadcast %74 : vector<8x1xf32> to vector<8x8xf32>
    %76 = arith.mulf %71, %75 : vector<8x8xf32>
    %77 = arith.truncf %76 : vector<8x8xf32> to vector<8x8xbf16>
    %78 = vector.extract_strided_slice %46 {offsets = [0, 8], sizes = [8, 8], strides = [1, 1]} : vector<8x32xbf16> to vector<8x8xbf16>
    %cst_35 = arith.constant dense<0.000000e+00> : vector<8x8xf32>
    %79 = tpu.matmul %77, %78, %cst_35 {dimension_numbers = #tpu.dot_dimension_numbers<[1], [0], [0], [1], [0, 0, 1, 1], [], []>} : vector<8x8xbf16>, vector<8x8xbf16>, vector<8x8xf32> -> vector<8x8xf32>
    %c0_36 = arith.constant 0 : index
    %c8 = arith.constant 8 : index
    %80 = vector.load %arg13[%c0_36, %c8] : memref<8x32xf32, #tpu.memory_space<vmem>>, vector<8x8xf32>
    tpu.vector_store %arg13[%c0_36, %c8], %79 {strides = array<i32>} : memref<8x32xf32, #tpu.memory_space<vmem>>, vector<8x8xf32>,
    %81 = vector.extract_strided_slice %44 {offsets = [0, 16], sizes = [8, 8], strides = [1, 1]} : vector<8x32xbf16> to vector<8x8xbf16>
    %82 = vector.extract_strided_slice %45 {offsets = [0, 16], sizes = [8, 8], strides = [1, 1]} : vector<8x32xbf16> to vector<8x8xbf16>
    %cst_37 = arith.constant dense<0.000000e+00> : vector<8x8xf32>
    %83 = tpu.matmul %81, %82, %cst_37 {dimension_numbers = #tpu.dot_dimension_numbers<[1], [1], [0], [0], [0, 0, 1, 0], [], []>} : vector<8x8xbf16>, vector<8x8xbf16>, vector<8x8xf32> -> vector<8x8xf32>
    %cst_38 = arith.constant dense<0xFF800000> : vector<8xf32>
    %84 = vector.multi_reduction <maximumf>, %83, %cst_38 [1] : vector<8x8xf32> to vector<8xf32>
    %85 = vector.shape_cast %84 : vector<8xf32> to vector<8x1xf32>
    %86 = vector.broadcast %85 : vector<8x1xf32> to vector<8x8xf32>
    %87 = arith.subf %83, %86 : vector<8x8xf32>
    %88 = math.exp %87 : vector<8x8xf32>
    %cst_39 = arith.constant dense<0.000000e+00> : vector<8xf32>
    %89 = vector.multi_reduction <add>, %88, %cst_39 [1] : vector<8x8xf32> to vector<8xf32>
    %90 = vector.shape_cast %89 : vector<8xf32> to vector<8x1xf32>
    %91 = tpu.reciprocal %90 {approx = true} : vector<8x1xf32> -> vector<8x1xf32>
    %92 = vector.broadcast %91 : vector<8x1xf32> to vector<8x8xf32>
    %93 = arith.mulf %88, %92 : vector<8x8xf32>
    %94 = arith.truncf %93 : vector<8x8xf32> to vector<8x8xbf16>
    %95 = vector.extract_strided_slice %46 {offsets = [0, 16], sizes = [8, 8], strides = [1, 1]} : vector<8x32xbf16> to vector<8x8xbf16>
    %cst_40 = arith.constant dense<0.000000e+00> : vector<8x8xf32>
    %96 = tpu.matmul %94, %95, %cst_40 {dimension_numbers = #tpu.dot_dimension_numbers<[1], [0], [0], [1], [0, 0, 1, 1], [], []>} : vector<8x8xbf16>, vector<8x8xbf16>, vector<8x8xf32> -> vector<8x8xf32>
    %c0_41 = arith.constant 0 : index
    %c16 = arith.constant 16 : index
    %97 = vector.load %arg13[%c0_41, %c16] : memref<8x32xf32, #tpu.memory_space<vmem>>, vector<8x8xf32>
    tpu.vector_store %arg13[%c0_41, %c16], %96 {strides = array<i32>} : memref<8x32xf32, #tpu.memory_space<vmem>>, vector<8x8xf32>,
    %98 = vector.extract_strided_slice %44 {offsets = [0, 24], sizes = [8, 8], strides = [1, 1]} : vector<8x32xbf16> to vector<8x8xbf16>
    %99 = vector.extract_strided_slice %45 {offsets = [0, 24], sizes = [8, 8], strides = [1, 1]} : vector<8x32xbf16> to vector<8x8xbf16>
    %cst_42 = arith.constant dense<0.000000e+00> : vector<8x8xf32>
    %100 = tpu.matmul %98, %99, %cst_42 {dimension_numbers = #tpu.dot_dimension_numbers<[1], [1], [0], [0], [0, 0, 1, 0], [], []>} : vector<8x8xbf16>, vector<8x8xbf16>, vector<8x8xf32> -> vector<8x8xf32>
    %cst_43 = arith.constant dense<0xFF800000> : vector<8xf32>
    %101 = vector.multi_reduction <maximumf>, %100, %cst_43 [1] : vector<8x8xf32> to vector<8xf32>
    %102 = vector.shape_cast %101 : vector<8xf32> to vector<8x1xf32>
    %103 = vector.broadcast %102 : vector<8x1xf32> to vector<8x8xf32>
    %104 = arith.subf %100, %103 : vector<8x8xf32>
    %105 = math.exp %104 : vector<8x8xf32>
    %cst_44 = arith.constant dense<0.000000e+00> : vector<8xf32>
    %106 = vector.multi_reduction <add>, %105, %cst_44 [1] : vector<8x8xf32> to vector<8xf32>
    %107 = vector.shape_cast %106 : vector<8xf32> to vector<8x1xf32>
    %108 = tpu.reciprocal %107 {approx = true} : vector<8x1xf32> -> vector<8x1xf32>
    %109 = vector.broadcast %108 : vector<8x1xf32> to vector<8x8xf32>
    %110 = arith.mulf %105, %109 : vector<8x8xf32>
    %111 = arith.truncf %110 : vector<8x8xf32> to vector<8x8xbf16>
    %112 = vector.extract_strided_slice %46 {offsets = [0, 24], sizes = [8, 8], strides = [1, 1]} : vector<8x32xbf16> to vector<8x8xbf16>
    %cst_45 = arith.constant dense<0.000000e+00> : vector<8x8xf32>
    %113 = tpu.matmul %111, %112, %cst_45 {dimension_numbers = #tpu.dot_dimension_numbers<[1], [0], [0], [1], [0, 0, 1, 1], [], []>} : vector<8x8xbf16>, vector<8x8xbf16>, vector<8x8xf32> -> vector<8x8xf32>
    %c0_46 = arith.constant 0 : index
    %c24 = arith.constant 24 : index
    %114 = vector.load %arg13[%c0_46, %c24] : memref<8x32xf32, #tpu.memory_space<vmem>>, vector<8x8xf32>
    tpu.vector_store %arg13[%c0_46, %c24], %113 {strides = array<i32>} : memref<8x32xf32, #tpu.memory_space<vmem>>, vector<8x8xf32>,
    %c0_47 = arith.constant 0 : index
    %c0_48 = arith.constant 0 : index
    %115 = vector.load %arg13[%c0_47, %c0_48] : memref<8x32xf32, #tpu.memory_space<vmem>>, vector<8x32xf32>
    %116 = arith.truncf %115 : vector<8x32xf32> to vector<8x32xbf16>
    %c0_49 = arith.constant 0 : index
    %c0_50 = arith.constant 0 : index
    %117 = vector.load %arg10[%c0_49, %c0_50] : memref<32x32xbf16, #tpu.memory_space<vmem>>, vector<32x32xbf16>
    %cst_51 = arith.constant dense<0.000000e+00> : vector<8x32xf32>
    %118 = tpu.matmul %116, %117, %cst_51 {dimension_numbers = #tpu.dot_dimension_numbers<[1], [0], [0], [1], [0, 0, 1, 1], [], []>} : vector<8x32xbf16>, vector<32x32xbf16>, vector<8x32xf32> -> vector<8x32xf32>
    %c0_52 = arith.constant 0 : index
    %c0_53 = arith.constant 0 : index
    %119 = vector.load %arg11[%c0_52, %c0_53] : memref<1x32xf32, #tpu.memory_space<vmem>>, vector<1x32xf32>
    %120 = vector.broadcast %119 : vector<1x32xf32> to vector<8x32xf32>
    %121 = arith.addf %118, %120 : vector<8x32xf32>
    %122 = arith.addf %1, %121 : vector<8x32xf32>
    %c0_54 = arith.constant 0 : index
    %c0_55 = arith.constant 0 : index
    %c0_56 = arith.constant 0 : index
    %123 = vector.load %arg12[%c0_54, %c0_55, %c0_56] : memref<1x8x32xf32, #tpu.memory_space<vmem>>, vector<1x8x32xf32>
    %124 = vector.shape_cast %123 : vector<1x8x32xf32> to vector<8x32xf32>
    %125 = vector.shape_cast %122 : vector<8x32xf32> to vector<1x8x32xf32>
    tpu.vector_store %arg12[%c0_54, %c0_55, %c0_56], %125 {strides = array<i32>} : memref<1x8x32xf32, #tpu.memory_space<vmem>>, vector<1x8x32xf32>,
    return
  }
  func.func @transform_0(%arg0: i32) -> (i32, i32, i32) {
    %c0_i32 = arith.constant 0 : i32
    %c0_i32_0 = arith.constant 0 : i32
    %c0_i32_1 = arith.constant 0 : i32
    return %arg0, %c0_i32, %c0_i32_0 : i32, i32, i32
  }
  func.func @transform_1(%arg0: i32) -> (i32, i32) {
    %c0_i32 = arith.constant 0 : i32
    %c0_i32_0 = arith.constant 0 : i32
    %c0_i32_1 = arith.constant 0 : i32
    return %c0_i32, %c0_i32_0 : i32, i32
  }
  func.func @transform_2(%arg0: i32) -> (i32, i32) {
    %c0_i32 = arith.constant 0 : i32
    %c0_i32_0 = arith.constant 0 : i32
    %c0_i32_1 = arith.constant 0 : i32
    return %c0_i32, %c0_i32_0 : i32, i32
  }
  func.func @transform_3(%arg0: i32) -> (i32, i32) {
    %c0_i32 = arith.constant 0 : i32
    %c0_i32_0 = arith.constant 0 : i32
    %c0_i32_1 = arith.constant 0 : i32
    return %c0_i32, %c0_i32_0 : i32, i32
  }
  func.func @transform_4(%arg0: i32) -> (i32, i32) {
    %c0_i32 = arith.constant 0 : i32
    %c0_i32_0 = arith.constant 0 : i32
    %c0_i32_1 = arith.constant 0 : i32
    return %c0_i32, %c0_i32_0 : i32, i32
  }
  func.func @transform_5(%arg0: i32) -> (i32, i32) {
    %c0_i32 = arith.constant 0 : i32
    %c0_i32_0 = arith.constant 0 : i32
    %c0_i32_1 = arith.constant 0 : i32
    return %c0_i32, %c0_i32_0 : i32, i32
  }
  func.func @transform_6(%arg0: i32) -> (i32, i32) {
    %c0_i32 = arith.constant 0 : i32
    %c0_i32_0 = arith.constant 0 : i32
    %c0_i32_1 = arith.constant 0 : i32
    return %c0_i32, %c0_i32_0 : i32, i32
  }
  func.func @transform_7(%arg0: i32) -> (i32, i32) {
    %c0_i32 = arith.constant 0 : i32
    %c0_i32_0 = arith.constant 0 : i32
    %c0_i32_1 = arith.constant 0 : i32
    return %c0_i32, %c0_i32_0 : i32, i32
  }
  func.func @transform_8(%arg0: i32) -> (i32, i32) {
    %c0_i32 = arith.constant 0 : i32
    %c0_i32_0 = arith.constant 0 : i32
    %c0_i32_1 = arith.constant 0 : i32
    return %c0_i32, %c0_i32_0 : i32, i32
  }
  func.func @transform_9(%arg0: i32) -> (i32, i32) {
    %c0_i32 = arith.constant 0 : i32
    %c0_i32_0 = arith.constant 0 : i32
    %c0_i32_1 = arith.constant 0 : i32
    return %c0_i32, %c0_i32_0 : i32, i32
  }
  func.func @transform_10(%arg0: i32) -> (i32, i32) {
    %c0_i32 = arith.constant 0 : i32
    %c0_i32_0 = arith.constant 0 : i32
    %c0_i32_1 = arith.constant 0 : i32
    return %c0_i32, %c0_i32_0 : i32, i32
  }
  func.func @transform_11(%arg0: i32) -> (i32, i32, i32) {
    %c0_i32 = arith.constant 0 : i32
    %c0_i32_0 = arith.constant 0 : i32
    %c0_i32_1 = arith.constant 0 : i32
    return %arg0, %c0_i32, %c0_i32_0 : i32, i32, i32
  }
}

</mosaic_0001>

<bundles_post_ra>
// kernel: tpu_custom_call.1
= control target key start
LH: loop header
LB: loop body
LE: loop exit
PB: predicated region body
PF: predicated region fallthrough
CT: control target
= control target key end

     0   :  { %s2514_s0 = inlined_call_operand.hbm [shape: f32[2,8,32], index: 0, kind: input, shape index: {}]   ;;  %s2515_s1 = inlined_call_operand.hbm [shape: f32[1,32], index: 1, kind: input, shape index: {}]   ;;  %s2516_s2 = inlined_call_operand.hbm [shape: f32[1,32], index: 2, kind: input, shape index: {}]   ;;  %s2517_s3 = inlined_call_operand.hbm [shape: bf16[32,32], index: 3, kind: input, shape index: {}]   ;;  %s2518_s4 = inlined_call_operand.hbm [shape: f32[1,32], index: 4, kind: input, shape index: {}]   ;;  %s2519_s5 = inlined_call_operand.hbm [shape: bf16[32,32], index: 5, kind: input, shape index: {}]   ;;  %s2520_s6 = inlined_call_operand.hbm [shape: f32[1,32], index: 6, kind: input, shape index: {}]   ;;  %s2521_s7 = inlined_call_operand.hbm [shape: bf16[32,32], index: 7, kind: input, shape index: {}]   ;;  %s2522_s8 = inlined_call_operand.hbm [shape: f32[1,32], index: 8, kind: input, shape index: {}]   ;;  %s2523_s9 = inlined_call_operand.vmem [shape: bf16[32,32], index: 9, kind: input, shape index: {}]   ;;  %s2524_s10 = inlined_call_operand.vmem [shape: f32[1,32], index: 10, kind: input, shape index: {}]   ;;  %s2525_s11 = inlined_call_operand.hbm [shape: f32[2,8,32], index: 11, kind: output, shape index: {}]  }
   0x1   :  { %2530 = sst [smem:[#allocation25_spill]] %s2515_s1 }
   0x2   :  { %2531 = sst [smem:[#allocation26_spill]] %s2516_s2 }
   0x3   :  { %2532 = sst [smem:[#allocation27_spill]] %s2517_s3 }
   0x4   :  { %2533 = sst [smem:[#allocation28_spill]] %s2518_s4 }
   0x5   :  { %2534 = sst [smem:[#allocation29_spill]] %s2519_s5 }
   0x6   :  { %2535 = sst [smem:[#allocation30_spill]] %s2520_s6 }
   0x7   :  { %16 = vsyncpa [#allocation4], 0 }
   0x8   :  { %18 = vsyncpa [#allocation4 + $0x1], 0 }
   0x9   :  { %19 = vsyncpa [#allocation7], 0 }
   0xa   :  { %20 = vsyncpa [#allocation10], 0 }
   0xb   :  { %21 = vsyncpa [#allocation13], 0 }
   0xc   :  { %22 = vsyncpa [#allocation16], 0 }
   0xd   :  { %23 = vsyncpa [#allocation5], 0 }
   0xe   :  { %25 = vsyncpa [#allocation5 + $0x1], 0  ;;  %s2149_s17 = smov 0   ;;  %s2151_s18 = smov 0  }
   0xf   :  { %s2153_s19 = smov 0   ;;  %s2155_s20 = smov 0  }
  0x10 LB: > { %s2069_s21 = smov [#allocation6]   ;;  %s2170_s23 = sadd.s32 4294967295, %s2067_s20   ;;  %s2067_s20 = sphi %s2155_s20, %s2567_s20   ;;  %s2063_s19 = sphi %s2153_s19, %s2566_s19   ;;  %s2059_s18 = sphi %s2151_s18, %s2565_s18   ;;  %s2055_s17 = sphi %s2149_s17, %s2564_s17  }
  0x11   : > { %s311_s22 = sshll.u32 %s2069_s21, 4  ;;  %p1427_p0 = scmp.ge.s32.totalorder %s2067_s20, 1  ;;  %s312_s22 = int_to_ptr.vmem [resolvable:$true] %s311_s22 }
  0x12   : > { %p2526_p1 = scmp.eq.s32.totalorder %s2170_s23, 0  ;;  %p298_p2 = scmp.lt.s32.totalorder %s2067_s20, 3 }
  0x13   : > { %s2070_s25 = smov [#allocation9]   ;;  %s2071_s28 = smov [#allocation12]  }
  0x14   : > { %p2175_p3 = pnand %p1427_p0, %p298_p2  ;;  %s332_s26 = sshll.u32 %s2070_s25, 4  ;;  %s2182_s26 = int_to_ptr.vmem [resolvable:$true] %s332_s26 }
  0x15   : > { %s356_s29 = sshll.u32 %s2071_s28, 4  ;;  %s1762_s12 = scalar_lea.vmem %s312_s22, 16  ;;  %s2190_s29 = int_to_ptr.vmem [resolvable:$true] %s356_s29 }
  0x16   : > { %s2536_s24 = scalar_select %p2175_p3, 1, 0 }
  0x17   : > { %p1624_p5 = pneg %p2175_p3  ;;  %p1763_p8 = scmp.ne.s32.totalorder %s312_s22, %s1762_s12 }
  0x18   : > { %s1769_s13 = scalar_lea.vmem %s312_s22, 32  ;;  %p1770_p11 = scmp.lt.s32.totalorder %s312_s22, %s312_s22 }
  0x19   : > { %p2186_p6 = pnand %p1624_p5, %p2526_p1  ;;  %p1771_p12 = scmp.lt.s32.totalorder %s1769_s13, %s1762_s12 }
  0x1b   : > { %p2194_p7 = pneg %p2186_p6  ;;  %p1772_p13 = por %p1771_p12, %p1770_p11 }
  0x1d   : > { %p1765_p9 = pnand %p1763_p8, %p2194_p7 }
  0x1f   : > { %p1766_p10 = pneg %p1765_p9 }
  0x21   : > { %p1773_p0 = pnand %p1772_p13, %p1766_p10 }
  0x23   : > { %1776 = shalt.err (!%p1773_p0)
}
  0x24   : > { %s2539_s1 = sld [smem:[#allocation25_spill]]  ;;  %s1788_s16 = scalar_lea.vmem %s2182_s26, 256 }
  0x25   : > { %p1789_p2 = scmp.ne.s32.totalorder %s2182_s26, %s1788_s16  ;;  %p1796_p9 = scmp.lt.s32.totalorder %s2182_s26, %s2182_s26 }
  0x26   : > { %p1797_p11 = scmp.lt.s32.totalorder %s1788_s16, %s1788_s16 }
  0x27   : > { %p1791_p5 = pnand %p1789_p2, %p2194_p7 }
  0x28   : > { %p1798_p10 = por %p1797_p11, %p1796_p9 }
  0x29   : > { %p1792_p8 = pneg %p1791_p5 }
  0x2a   : > { %1627 = dma.hbm_to_vmem [thread:$0]  (!%p2186_p6), %s2539_s1, 16, %s312_s22, [#allocation7]  }
  0x2b   : > { %p1799_p12 = pnand %p1798_p10, %p1792_p8 }
  0x2d   : > { %1802 = shalt.err (!%p1799_p12)
}
  0x2e   : > { %s2072_s21 = smov 64   ;;  %s2073_s25 = smov 4  }
  0x2f   : > { %s2540_s3 = sld [smem:[#allocation27_spill]]  ;;  %s1814_s12 = scalar_lea.vmem %s2190_s29, 256 }
  0x30   : > { %p1815_p13 = scmp.ne.s32.totalorder %s2190_s29, %s1814_s12  ;;  %p1822_p5 = scmp.lt.s32.totalorder %s2190_s29, %s2190_s29 }
  0x31   : > { %p1823_p8 = scmp.lt.s32.totalorder %s1814_s12, %s1814_s12 }
  0x32   : > { %p1817_p0 = pnand %p1815_p13, %p2194_p7 }
  0x33   : > { %p1824_p9 = por %p1823_p8, %p1822_p5 }
  0x34   : > { %p1818_p2 = pneg %p1817_p0 }
  0x35   : > { %1633 = dma.hbm_to_vmem [thread:$0]  (!%p2186_p6), %s2540_s3, 256, %s2182_s26, [#allocation10], %s2072_s21, %s2072_s21, %s2073_s25  }
  0x36   : > { %p1825_p11 = pnand %p1824_p9, %p1818_p2 }
  0x38   : > { %1828 = shalt.err (!%p1825_p11)
}
  0x39   : > { %s2541_s5 = sld [smem:[#allocation29_spill]]  ;;  %s2074_s26 = smov [#allocation15]  }
  0x3a   : > { %s380_s15 = sshll.u32 %s2074_s26, 4  ;;  %s2075_s16 = smov [#allocation8]   ;;  %s381_s15 = int_to_ptr.vmem [resolvable:$true] %s380_s15 }
  0x3b   : > { %s322_s22 = sshll.u32 %s2075_s16, 4  ;;  %s1840_s28 = scalar_lea.vmem %s381_s15, 256  ;;  %s323_s22 = int_to_ptr.vmem [resolvable:$true] %s322_s22 }
  0x3c   : > { %p1841_p10 = scmp.ne.s32.totalorder %s381_s15, %s1840_s28  ;;  %p1848_p0 = scmp.lt.s32.totalorder %s381_s15, %s381_s15 }
  0x3d   : > { %p1849_p2 = scmp.lt.s32.totalorder %s1840_s28, %s1840_s28 }
  0x3e   : > { %p1843_p12 = pnand %p1841_p10, %p2194_p7 }
  0x3f   : > { %1639 = dma.hbm_to_vmem [thread:$0]  (!%p2186_p6), %s2541_s5, 256, %s2190_s29, [#allocation13], %s2072_s21, %s2072_s21, %s2073_s25  }
  0x40   : > { %p1844_p13 = pneg %p1843_p12  ;;  %p1850_p5 = por %p1849_p2, %p1848_p0 }
  0x42   : > { %p1851_p8 = pnand %p1850_p5, %p1844_p13 }
  0x44   : > { %1854 = shalt.err (!%p1851_p8)
}
  0x45   : > { %1645 = dma.hbm_to_vmem [thread:$0]  (!%p2186_p6), %s2521_s7, 256, %s381_s15, [#allocation16], %s2072_s21, %s2072_s21, %s2073_s25  }
  0x46   : > { %s1866_s13 = scalar_lea.vmem %s323_s22, 16  ;;  %s1873_s14 = scalar_lea.vmem %s323_s22, 32 }
  0x47   : > { %p1867_p9 = scmp.ne.s32.totalorder %s323_s22, %s1866_s13  ;;  %p1874_p12 = scmp.lt.s32.totalorder %s323_s22, %s323_s22 }
  0x48   : > { %p1875_p13 = scmp.lt.s32.totalorder %s1873_s14, %s1866_s13 }
  0x49   : > { %p1869_p11 = pnand %p1867_p9, %p2194_p7 }
  0x4a   : > { %p1876_p0 = por %p1875_p13, %p1874_p12 }
  0x4b   : > { %p1870_p10 = pneg %p1869_p11 }
  0x4d   : > { %p1877_p2 = pnand %p1876_p0, %p1870_p10 }
  0x4f   : > { %1880 = shalt.err (!%p1877_p2)
}
  0x50   : > { %s2542_s2 = sld [smem:[#allocation26_spill]]  ;;  %s2076_s21 = smov [#allocation11]  }
  0x51   : > { %s346_s25 = sshll.u32 %s2076_s21, 4  ;;  %s2077_s15 = smov [#allocation14]   ;;  %s347_s25 = int_to_ptr.vmem [resolvable:$true] %s346_s25 }
  0x52   : > { %s370_s28 = sshll.u32 %s2077_s15, 4  ;;  %s1892_s29 = scalar_lea.vmem %s347_s25, 16  ;;  %s371_s28 = int_to_ptr.vmem [resolvable:$true] %s370_s28 }
  0x53   : > { %p1893_p5 = scmp.ne.s32.totalorder %s347_s25, %s1892_s29  ;;  %s1899_s12 = scalar_lea.vmem %s347_s25, 32 }
  0x54   : > { %p1900_p11 = scmp.lt.s32.totalorder %s347_s25, %s347_s25  ;;  %p1901_p10 = scmp.lt.s32.totalorder %s1899_s12, %s1892_s29 }
  0x55   : > { %p1895_p8 = pnand %p1893_p5, %p2194_p7 }
  0x56   : > { %1630 = dma.hbm_to_vmem [thread:$0]  (!%p2186_p6), %s2542_s2, 16, %s323_s22, [#allocation7]  }
  0x57   : > { %p1896_p9 = pneg %p1895_p8  ;;  %p1902_p12 = por %p1901_p10, %p1900_p11 }
  0x59   : > { %p1903_p13 = pnand %p1902_p12, %p1896_p9 }
  0x5b   : > { %1906 = shalt.err (!%p1903_p13)
}
  0x5c   : > { %s2543_s4 = sld [smem:[#allocation28_spill]]  ;;  %s1918_s14 = scalar_lea.vmem %s371_s28, 16 }
  0x5d   : > { %p1919_p0 = scmp.ne.s32.totalorder %s371_s28, %s1918_s14  ;;  %s1925_s26 = scalar_lea.vmem %s371_s28, 32 }
  0x5e   : > { %p1926_p8 = scmp.lt.s32.totalorder %s371_s28, %s371_s28  ;;  %p1927_p4 = scmp.lt.s32.totalorder %s1925_s26, %s1918_s14 }
  0x5f   : > { %p1921_p2 = pnand %p1919_p0, %p2194_p7 }
  0x60   : > { %p1928_p1 = por %p1927_p4, %p1926_p8 }
  0x61   : > { %p1922_p5 = pneg %p1921_p2 }
  0x62   : > { %1636 = dma.hbm_to_vmem [thread:$0]  (!%p2186_p6), %s2543_s4, 16, %s347_s25, [#allocation10]  }
  0x63   : > { %p1929_p11 = pnand %p1928_p1, %p1922_p5 }
  0x65   : > { %1932 = shalt.err (!%p1929_p11)
}
  0x66   : > { %s2544_s6 = sld [smem:[#allocation30_spill]]  ;;  %s2078_s25 = smov [#allocation17]  }
  0x67   : > { %s394_s15 = sshll.u32 %s2078_s25, 4  ;;  %s395_s15 = int_to_ptr.vmem [resolvable:$true] %s394_s15 }
  0x68   : > { %s1944_s29 = scalar_lea.vmem %s395_s15, 16  ;;  %s1951_s12 = scalar_lea.vmem %s395_s15, 32 }
  0x69   : > { %p1945_p9 = scmp.ne.s32.totalorder %s395_s15, %s1944_s29  ;;  %p1952_p13 = scmp.lt.s32.totalorder %s395_s15, %s395_s15 }
  0x6a   : > { %p1953_p4 = scmp.lt.s32.totalorder %s1951_s12, %s1944_s29 }
  0x6b   : > { %p1947_p10 = pnand %p1945_p9, %p2194_p7 }
  0x6c   : > { %1642 = dma.hbm_to_vmem [thread:$0]  (!%p2186_p6), %s2544_s6, 16, %s371_s28, [#allocation13]  }
  0x6d   : > { %p1948_p12 = pneg %p1947_p10  ;;  %p1954_p1 = por %p1953_p4, %p1952_p13 }
  0x6f   : > { %p1955_p0 = pnand %p1954_p1, %p1948_p12 }
  0x71   : > { %1958 = shalt.err (!%p1955_p0)
}
  0x72   : > { %1648 = dma.hbm_to_vmem [thread:$0]  (!%p2186_p6), %s2522_s8, 16, %s395_s15, [#allocation16]  }
  0x73   : > { %s1426_s30 = sadd.s32 4294967294, %s2067_s20   ;;  %s2275_s27 = sadd.s32 1, %s2067_s20  }
  0x74   : > { %s35_s28 = ssub.s32 %s2067_s20, %s2275_s27  ;;  %s38_s14 = sadd.s32 1, %s2063_s19 }
  0x75   : > { %p36_p7 = scmp.eq.s32.totalorder %s35_s28, 0  ;;  %p45_p2 = scmp.ne.s32.totalorder %s2063_s19, %s2059_s18 }
  0x76   : > { %p46_p5 = scmp.eq.s32.totalorder %s2067_s20, 0  ;;  %p51_p8 = scmp.ne.s32.totalorder %s2059_s18, %s2055_s17 }
  0x77   : > { %s2286_s26 = scalar_select %p36_p7, %s2063_s19, %s38_s14  }
  0x78   : > { %p2288_p11 = por %p46_p5, %p45_p2  ;;  %p2546_p9 = scmp.eq.s32.totalorder %s2170_s23, 0 }
  0x79   : > { %p285_p10 = scmp.eq.s32.totalorder %s2170_s23, 1  ;;  %p291_p12 = scmp.eq.s32.totalorder %s1426_s30, 1 }
  0x7a   : > { %p2294_p6 = por %p2546_p9, %p51_p8  ;;  %p1665_p13 = scmp.lt.s32.totalorder %s2067_s20, 2 }
  0x7b   : > { %s411_s25 = sand.u32 1, %s2063_s19   ;;  %p2301_p4 = por %p285_p10, %p45_p2 }
  0x7c   : > { %s2547_s21 = scalar_select %p2294_p6, 1, 0 }
  0x7d   : > { %s2548_s15 = scalar_select %p2301_p4, 1, 0 }
  0x7e   : > { %p2305_p1 = por %p291_p12, %p51_p8  ;;  %s1437_s12 = sshll.u32 %s411_s25, 3 }
  0x7f   : > { %s1438_s13 = sshll.u32 %s2067_s20, 7  ;;  %s415_s30 = scalar_lea.vmem [#allocation3], %s1437_s12 }
  0x80   : > { %s2549_s29 = scalar_select %p2305_p1, 1, 0 }
  0x81   : > { %s2313_s14 = scalar_lea.hbm %s2514_s0, %s1438_s13  ;;  %s422_s1 = sshll.u32 %s415_s30, 4  ;;  %s423_s1 = int_to_ptr.vmem [resolvable:$true] %s422_s1 }
  0x82   : > { %p2317_p0 = pnand %p1665_p13, %p2288_p11  ;;  %s412_s3 = scalar_lea.sflag [#allocation4], %s411_s25 }
  0x83   : > { %s1959_s4 = scalar_lea.hbm %s2313_s14, 128  ;;  %s1964_s28 = scalar_lea.hbm %s2514_s0, 256 }
  0x84   : > { %p1960_p7 = scmp.ne.s32.totalorder %s2313_s14, %s1959_s4  ;;  %p1961_p2 = pneg %p2317_p0 }
  0x85   : > { %p1965_p9 = scmp.lt.s32.totalorder %s2313_s14, %s2514_s0  ;;  %p1966_p11 = scmp.lt.s32.totalorder %s1964_s28, %s1959_s4 }
  0x86   : > { %p1962_p5 = pnand %p1961_p2, %p1960_p7 }
  0x87   : > { %p1967_p10 = por %p1966_p11, %p1965_p9 }
  0x88   : > { %p1963_p8 = pneg %p1962_p5 }
  0x8a   : > { %p1968_p12 = pnand %p1967_p10, %p1963_p8 }
  0x8c   : > { %1971 = shalt.err (!%p1968_p12)
}
  0x8d   : > { %s1972_s16 = scalar_lea.vmem %s423_s1, 128  ;;  %s2079_s25 = smov [#allocation3]  }
  0x8e   : > { %p1973_p13 = scmp.ne.s32.totalorder %s423_s1, %s1972_s16  ;;  %s1977_s5 = sshll.u32 %s2079_s25, 4  ;;  %s1978_s5 = int_to_ptr.vmem [resolvable:$false] %s1977_s5 }
  0x8f   : > { %s1979_s6 = scalar_lea.vmem %s1978_s5, 256  ;;  %p1980_p7 = scmp.lt.s32.totalorder %s423_s1, %s1978_s5 }
  0x90   : > { %p1975_p1 = pnand %p1973_p13, %p1961_p2  ;;  %p1981_p5 = scmp.lt.s32.totalorder %s1979_s6, %s1972_s16 }
  0x92   : > { %p1976_p4 = pneg %p1975_p1  ;;  %p1982_p6 = por %p1981_p5, %p1980_p7 }
  0x94   : > { %p1983_p3 = pnand %p1982_p6, %p1976_p4 }
  0x96   : > { %1986 = shalt.err (!%p1983_p3)
}
  0x97   : > { %1652 = dma.hbm_to_vmem [thread:$0]  (!%p2317_p0), %s2313_s14, 128, %s423_s1, %s412_s3  }
  0x98   : > { %p2551_p8 = scmp.ne.s32.totalorder %s2536_s24, 0 }
  0x99   : > { %s2338_s4 = sand.u32 (!%p2551_p8), 1, %s2059_s18   ;;  %p2552_p6 = scmp.ne.s32.totalorder (!%p2551_p8), %s2547_s21, 0 }
  0x9a   : > { %431 = sbr.rel (%p2551_p8) target bundleno = 1893 (0x765), region = 64  ;;  %s1440_s13 = sshll.u32 (!%p2551_p8), %s2338_s4, 3 }
  0x9b   : > { %s434_s5 = scalar_lea.sflag (!%p2551_p8), [#allocation4], %s2338_s4  ;;  %s437_s6 = scalar_lea.vmem (!%p2551_p8), [#allocation3], %s1440_s13 }
  0x9f   : > { %2030 = dma.done.wait (%p2552_p6), %s434_s5, 128  }
  0xa0   : > { %2032 = vsyncadd (%p2552_p6), %s434_s5, 4294967168  ;;  %p2553_p3 = scmp.eq.s32.totalorder %s2170_s23, 0 }
  0xa2   : > { %2034 = dma.done.wait (%p2553_p3), [#allocation7], 32   ;;  %p2554_p4 = pmov %p2553_p3 }
  0xa3   : > { %p2555_p1 = pmov %p2553_p3 }
  0xa4   : > { %2036 = vsyncadd (%p2554_p4), [#allocation7], 4294967264 }
  0xa5   : > { %2038 = dma.done.wait (%p2555_p1), [#allocation10], 272   ;;  %p2556_p0 = pmov %p2555_p1 }
  0xa7   : > { %2040 = vsyncadd (%p2556_p0), [#allocation10], 4294967024  ;;  %p2557_p2 = pmov %p2556_p0 }
  0xa8   : > { %p2558_p9 = pmov %p2556_p0 }
  0xa9   : > { %2042 = dma.done.wait (%p2557_p2), [#allocation13], 272  }
  0xaa   : > { %2044 = vsyncadd (%p2558_p9), [#allocation13], 4294967024  ;;  %p2559_p11 = pmov %p2556_p0 }
  0xab   : > { %p2560_p10 = pmov %p2556_p0 }
  0xac   : > { %2046 = dma.done.wait (%p2559_p11), [#allocation16], 272  }
  0xad   : > { %2048 = vsyncadd (%p2560_p10), [#allocation16], 4294967024  ;;  %vm512_vm0 = vcmask 261120   ;;  %v2364_v0 = vld [vmem:[%s437_s6] sm:$0xff]  ;;  %v2080_v9 = vmov 0.0   ;;  %v1727_v10 = vld [vmem:[#allocation9] sm:$0xff]  }
  0xae   : > { %v513_v1 = vsel %vm512_vm0, %v2364_v0, 0.0  ;;  %v1725_v7 = vld [vmem:[#allocation9 + $0x8] sm:$0xff]   ;;  %v1726_v8 = vld [vmem:[#allocation12 + $0x8] sm:$0xff]   ;;  %1508 = vmatprep.subr.bf16.mxu0 %v2080_v9  ;;  %1516 = vmatprep.subr.bf16.mxu1 %v2080_v9  ;;  %v1728_v11 = vld [vmem:[#allocation12] sm:$0xff]   ;;  %vm2081_vm1 = vmmov 0   ;;  %vm738_vm2 = vcmask 64512  }
  0xaf   : > { %514 = vadd.xlane.f32.xlu0 %v513_v1  ;;  %1509 = vmatpush3.bf16.msra.mxu0 %v1725_v7  ;;  %v1450_v16 = vld [vmem:[#allocation6] ss:$0 sm:$0xff]  ;;  %v1451_v18 = vld [vmem:[#allocation8] ss:$0 sm:$0xff]  ;;  %v1729_v21 = vld [vmem:[#allocation15 + $0x8] sm:$0xff]   ;;  %s2082_s1 = smov 112  }
  0xb0   : > { %1517 = vmatpush3.bf16.msra.mxu1 %v1726_v8  ;;  %1510 = vmatprep.subr.bf16.mxu0 %v2080_v9  ;;  %v1730_v23 = vld [vmem:[#allocation15] sm:$0xff]   ;;  %v1452_v24 = vld [vmem:[#allocation11] ss:$0 sm:$0xff]  ;;  %v1456_v25 = vld [vmem:[#allocation14] ss:$0 sm:$0xff]  ;;  %s2083_s2 = smov 120  }
  0xb1   : > { %1518 = vmatprep.subr.bf16.mxu1 %v2080_v9  ;;  %1512 = vmatprep.mubr.msk.bf16.mxu0 %vm2081_vm1, %v2080_v9  ;;  %v1460_v39 = vld [vmem:[#allocation17] ss:$0 sm:$0xff]  ;;  %vm800_vm3 = vcmask 1043456   ;;  %s2084_s3 = smov 104   ;;  %s2085_s24 = smov 8   ;;  %vm962_vm4 = vcmask 130112  }
  0xb2   : > { %1520 = vmatprep.mubr.msk.bf16.mxu1 %vm2081_vm1, %v2080_v9  ;;  %s2086_s21 = smov 16   ;;  %s2087_s30 = smov 24   ;;  %vm1078_vm5 = vcmask 195712   ;;  %vm1194_vm6 = vcmask 261312  }
  0xb3   : > { %1511 = vmatpush3.bf16.msra.mxu0 %v1727_v10  ;;  %s1477_s5 = sshll.u32 %s2170_s23, 7  ;;  %s507_s6 = scalar_lea.vmem [#allocation18], %s1440_s13 }
  0xb4   : > { %1519 = vmatpush3.bf16.msra.mxu1 %v1728_v11  ;;  %1524 = vmatprep.subr.bf16.mxu0 %v2080_v9  ;;  %s1267_s23 = scalar_lea.sflag [#allocation5], %s2338_s4  ;;  %p2561_p13 = scmp.ne.s32.totalorder %s2548_s15, 0 }
  0xb5   : > { %1532 = vmatprep.subr.bf16.mxu1 %v2080_v9 }
 0x138   : > { %v515_v2 = vpop.xlane.xlu0 %514 }
 0x139   : > { %v517_v3 = vmul.f32 0.03125, %v515_v2 }
 0x13b   : > { %v518_v4 = vsub.f32 %v2364_v0, %v517_v3 }
 0x13d   : > { %v519_v5 = vmul.f32 %v518_v4, %v518_v4 }
 0x13f   : > { %v520_v6 = vsel %vm512_vm0, %v519_v5, 0.0 }
 0x140   : > { %521 = vadd.xlane.f32.xlu0 %v520_v6 }
 0x1c9   : > { %v522_v12 = vpop.xlane.xlu0 %521 }
 0x1ca   : > { %v523_v13 = vmul.f32 0.03125, %v522_v12 }
 0x1cc   : > { %v524_v14 = vadd.f32 1e-05, %v523_v13 }
 0x1ce   : > { %1733 = vrsqrt.f32 %v524_v14 }
 0x1db   : > { %v1734_v15 = vpop.eup %1733 }
 0x1dc   : > { %v526_v17 = vmul.f32 %v1734_v15, %v518_v4 }
 0x1de   : > { %v533_v19 = vmul.f32 %v1450_v16, %v526_v17 }
 0x1e0   : > { %v540_v20 = vadd.f32 %v1451_v18, %v533_v19 }
 0x1e2   : > { %v541_v22 = vpack.c.bf16 %v540_v20, %v540_v20 }
 0x1e4   : > { %1513 = vmatmul.mubr.msk.bf16.vlgmr.msra.gmra.mxu0 %vm512_vm0, %v541_v22  ;;  %1521 = vmatmul.mubr.msk.bf16.vlgmr.msra.gmra.mxu1 %vm512_vm0, %v541_v22 }
 0x1e5   : > { %1525 = vmatpush3.bf16.msra.mxu0 %v1729_v21  ;;  %1528 = vmatprep.mubr.msk.bf16.mxu0 %vm2081_vm1, %v2080_v9 }
 0x1e6   : > { %1526 = vmatprep.subr.bf16.mxu0 %v2080_v9  ;;  %1534 = vmatprep.mubr.msk.bf16.mxu1 %vm2081_vm1, %v2080_v9 }
 0x1e9   : > { %1527 = vmatpush3.bf16.msra.mxu0 %v1730_v23 }
 0x1ea   : > { %1538 = vmatprep.subr.bf16.mxu0 %v2080_v9 }
 0x1ec   : > { %1529 = vmatmul.mubr.msk.bf16.vlgmr.msra.gmra.mxu0 %vm512_vm0, %v541_v22 }
 0x1ed   : > { %1540 = vmatprep.mubr.msk.bf16.mxu0 %vm2081_vm1, %v2080_v9 }
 0x2a4   : > { %v602_v26 = vpop.f32.mrf.mxu0  ;;  %v665_v27 = vpop.f32.mrf.mxu1 }
 0x2a5   : > { %v603_v28 = vadd.f32 %v1452_v24, %v602_v26  ;;  %v666_v29 = vadd.f32 %v1456_v25, %v665_v27 }
 0x2a6   : > { %v1514_v30 = vpop.f32.mrf.mxu0  ;;  %v1522_v31 = vpop.f32.mrf.mxu1 }
 0x2a7   : > { %v734_v32 = vmul.f32 0.35355338, %v603_v28  ;;  %v736_v33 = vpack.c.bf16 %v666_v29, %v666_v29 }
 0x2a8   : > { %v605_v34 = vpop.f32.mrf.mxu0  ;;  %v668_v35 = vpop.f32.mrf.mxu1 }
 0x2a9   : > { %966 = vrot.lane.b32.xlu0 %v736_v33, %s2082_s1  ;;  %849 = vrot.lane.b32.xlu1 %v736_v33, %s2083_s2  ;;  %v743_v36 = vsel %vm738_vm2, %v736_v33, 0  ;;  %v735_v40 = vpack.c.bf16 %v734_v32, %v734_v32 }
 0x2aa   : > { %v1515_v37 = vpop.f32.mrf.mxu0  ;;  %v1523_v38 = vpop.f32.mrf.mxu1  ;;  %1533 = vmatpush3.bf16.xpose.msra.mxu1 %v743_v36 }
 0x2ab   : > { %1544 = vmatprep.subr.bf16.mxu1 %v2080_v9 }
 0x2ac   : > { %v728_v41 = vpop.f32.mrf.mxu0 }
 0x2ad   : > { %v729_v42 = vadd.f32 %v1460_v39, %v728_v41  ;;  %846 = vrot.lane.b32.xlu1 %v735_v40, %s2083_s2 }
 0x2ae   : > { %v1530_v43 = vpop.f32.mrf.mxu0 }
 0x2af   : > { %v2396_v44 = vpack.c.bf16 %v729_v42, %v729_v42 }
 0x2b0   : > { %v731_v45 = vpop.f32.mrf.mxu0 }
 0x2b1   : > { %964 = vrot.lane.b32.xlu1 %v735_v40, %s2082_s1  ;;  %1535 = vmatmul.mubr.msk.bf16.vlgmr.msra.gmra.mxu1 %vm738_vm2, %v735_v40  ;;  %v802_v46 = vsel %vm800_vm3, %v2396_v44, 0 }
 0x2b2   : > { %v1531_v47 = vpop.f32.mrf.mxu0  ;;  %1539 = vmatpush3.bf16.msra.mxu0 %v802_v46  ;;  %1546 = vmatprep.mubr.msk.bf16.mxu1 %vm2081_vm1, %v2080_v9 }
 0x2b3   : > { %1550 = vmatprep.subr.bf16.mxu0 %v2080_v9 }
 0x2b5   : > { %1082 = vrot.lane.b32.xlu1 %v736_v33, %s2084_s3 }
 0x2b9   : > { %1080 = vrot.lane.b32.xlu1 %v735_v40, %s2084_s3 }
 0x31b   : > { %v850_v48 = vpop.permute.xlu1 %849  ;;  %v967_v51 = vpop.permute.xlu0 %966 }
 0x31c   : > { %v855_v49 = vsel %vm738_vm2, %v850_v48, 0  ;;  %v972_v53 = vsel %vm738_vm2, %v967_v51, 0 }
 0x31d   : > { %1545 = vmatpush3.bf16.xpose.msra.mxu1 %v855_v49 }
 0x31e   : > { %1556 = vmatprep.subr.bf16.mxu1 %v2080_v9 }
 0x31f   : > { %v847_v50 = vpop.permute.xlu1 %846 }
 0x323   : > { %v965_v52 = vpop.permute.xlu1 %964 }
 0x324   : > { %1547 = vmatmul.mubr.msk.bf16.vlgmr.msra.gmra.mxu1 %vm738_vm2, %v847_v50 }
 0x325   : > { %1557 = vmatpush3.bf16.xpose.msra.mxu1 %v972_v53  ;;  %1558 = vmatprep.mubr.msk.bf16.mxu1 %vm2081_vm1, %v2080_v9 }
 0x326   : > { %1568 = vmatprep.subr.bf16.mxu1 %v2080_v9 }
 0x327   : > { %v1083_v54 = vpop.permute.xlu1 %1082 }
 0x328   : > { %v1088_v55 = vsel %vm738_vm2, %v1083_v54, 0 }
 0x32b   : > { %v1081_v56 = vpop.permute.xlu1 %1080 }
 0x32c   : > { %1559 = vmatmul.mubr.msk.bf16.vlgmr.msra.gmra.mxu1 %vm738_vm2, %v965_v52 }
 0x32d   : > { %1569 = vmatpush3.bf16.xpose.msra.mxu1 %v1088_v55  ;;  %1570 = vmatprep.mubr.msk.bf16.mxu1 %vm2081_vm1, %v2080_v9 }
 0x32e   : > { %1580 = vmatprep.subr.bf16.mxu1 %v2080_v9 }
 0x334   : > { %1571 = vmatmul.mubr.msk.bf16.vlgmr.msra.gmra.mxu1 %vm738_vm2, %v1081_v56 }
 0x335   : > { %1584 = vmatprep.mubr.msk.bf16.mxu1 %vm2081_vm1, %v2080_v9 }
 0x371   : > { %v779_v57 = vpop.f32.mrf.mxu1 }
 0x372   : > { %v785_v58 = vsel %vm738_vm2, %v779_v57, -inf }
 0x373   : > { %786 = vmax.xlane.f32.xlu1 %v785_v58  ;;  %v1536_v59 = vpop.f32.mrf.mxu1 }
 0x375   : > { %v782_v60 = vpop.f32.mrf.mxu1 }
 0x377   : > { %v1537_v61 = vpop.f32.mrf.mxu1 }
 0x3e4   : > { %v891_v62 = vpop.f32.mrf.mxu1 }
 0x3e5   : > { %v897_v63 = vsel %vm738_vm2, %v891_v62, -inf }
 0x3e6   : > { %898 = vmax.xlane.f32.xlu0 %v897_v63  ;;  %v1548_v1 = vpop.f32.mrf.mxu1 }
 0x3e8   : > { %v894_v2 = vpop.f32.mrf.mxu1 }
 0x3ea   : > { %v1549_v3 = vpop.f32.mrf.mxu1 }
 0x3ec   : > { %v1008_v4 = vpop.f32.mrf.mxu1 }
 0x3ed   : > { %v1014_v5 = vsel %vm738_vm2, %v1008_v4, -inf }
 0x3ee   : > { %1015 = vmax.xlane.f32.xlu1 %v1014_v5  ;;  %v1560_v6 = vpop.f32.mrf.mxu1 }
 0x3ef   : > { %v1731_v6 = vld [vmem:[%s2523_s9 + $0x8] sm:$0xff]  }
 0x3f0   : > { %v1011_v7 = vpop.f32.mrf.mxu1  ;;  %1581 = vmatpush3.bf16.msra.mxu1 %v1731_v6 }
 0x3f1   : > { %v1732_v7 = vld [vmem:[%s2523_s9] sm:$0xff]   ;;  %1582 = vmatprep.subr.bf16.mxu1 %v2080_v9 }
 0x3f2   : > { %v1561_v8 = vpop.f32.mrf.mxu1 }
 0x3f4   : > { %v1124_v10 = vpop.f32.mrf.mxu1  ;;  %1583 = vmatpush3.bf16.msra.mxu1 %v1732_v7 }
 0x3f5   : > { %v1130_v11 = vsel %vm738_vm2, %v1124_v10, -inf }
 0x3f6   : > { %1131 = vmax.xlane.f32.xlu1 %v1130_v11  ;;  %v1572_v12 = vpop.f32.mrf.mxu1 }
 0x3f8   : > { %v1127_v13 = vpop.f32.mrf.mxu1 }
 0x3fa   : > { %v1573_v14 = vpop.f32.mrf.mxu1 }
 0x3fc   : > { %v787_v15 = vpop.xlane.xlu1 %786 }
 0x3fd   : > { %v788_v16 = vsub.f32 %v779_v57, %v787_v15 }
 0x3ff   : > { %v789_v17 = vmul.f32 1.442695, %v788_v16 }
 0x401   : > { %1735 = vpow2.f32 %v789_v17  ;;  %v1472_v17 = vld [vmem:[%s2524_s10] ss:$0 sm:$0xff] }
 0x40e   : > { %v1736_v18 = vpop.eup %1735 }
 0x40f   : > { %v791_v19 = vsel %vm738_vm2, %v1736_v18, 0.0 }
 0x410   : > { %792 = vadd.xlane.f32.xlu0 %v791_v19 }
 0x46f   : > { %v899_v20 = vpop.xlane.xlu0 %898 }
 0x470   : > { %v900_v21 = vsub.f32 %v891_v62, %v899_v20 }
 0x472   : > { %v901_v22 = vmul.f32 1.442695, %v900_v21 }
 0x474   : > { %1737 = vpow2.f32 %v901_v22 }
 0x477   : > { %v1016_v23 = vpop.xlane.xlu1 %1015 }
 0x478   : > { %v1017_v24 = vsub.f32 %v1008_v4, %v1016_v23 }
 0x47a   : > { %v1018_v25 = vmul.f32 1.442695, %v1017_v24 }
 0x47c   : > { %1739 = vpow2.f32 %v1018_v25 }
 0x47f   : > { %v1132_v31 = vpop.xlane.xlu1 %1131 }
 0x480   : > { %v1133_v32 = vsub.f32 %v1124_v10, %v1132_v31 }
 0x481   : > { %v1738_v26 = vpop.eup %1737 }
 0x482   : > { %v903_v27 = vsel %vm738_vm2, %v1738_v26, 0.0  ;;  %v1134_v33 = vmul.f32 1.442695, %v1133_v32 }
 0x483   : > { %904 = vadd.xlane.f32.xlu1 %v903_v27 }
 0x489   : > { %v1740_v28 = vpop.eup %1739 }
 0x48a   : > { %v1020_v29 = vsel %vm738_vm2, %v1740_v28, 0.0 }
 0x48b   : > { %1021 = vadd.xlane.f32.xlu0 %v1020_v29 }
 0x494   : > { %1026 = vrot.lane.b32.xlu1 %v2396_v44, %s2082_s1  ;;  %s1280_s1 = sshll.u32 %s507_s6, 4  ;;  %s2472_s1 = int_to_ptr.vmem [resolvable:$true] %s1280_s1 }
 0x495   : > { %s1987_s13 = scalar_lea.vmem %s2472_s1, 128 }
 0x496   : > { %p1988_p12 = scmp.ne.s32.totalorder %s2472_s1, %s1987_s13 }
 0x498   : > { %p1989_p7 = pnand %p1988_p12, %p2561_p13 }
 0x499   : > { %v793_v30 = vpop.xlane.xlu0 %792 }
 0x49a   : > { %1741 = vrcp.f32 %v793_v30  ;;  %p1990_p5 = pneg %p1989_p7 }
 0x49b   : > { %1743 = vpow2.f32 %v1134_v33 }
 0x4a1   : > { %910 = vrot.lane.b32.xlu0 %v2396_v44, %s2083_s2 }
 0x4a7   : > { %v1742_v34 = vpop.eup %1741 }
 0x4a8   : > { %v795_v35 = vmul.f32 %v1742_v34, %v1736_v18  ;;  %v1744_v37 = vpop.eup %1743 }
 0x4a9   : > { %v1136_v38 = vsel %vm738_vm2, %v1744_v37, 0.0 }
 0x4aa   : > { %v796_v36 = vpack.c.bf16 %v795_v35, %v795_v35 }
 0x4ac   : > { %1541 = vmatmul.mubr.msk.bf16.vlgmr.msra.gmra.mxu0 %vm738_vm2, %v796_v36 }
 0x4ad   : > { %1552 = vmatprep.mubr.msk.bf16.mxu0 %vm2081_vm1, %v2080_v9 }
 0x4b8   : > { %1137 = vadd.xlane.f32.xlu1 %v1136_v38 }
 0x4c9   : > { %1142 = vrot.lane.b32.xlu1 %v2396_v44, %s2084_s3 }
 0x50c   : > { %v905_v39 = vpop.xlane.xlu1 %904 }
 0x50d   : > { %1745 = vrcp.f32 %v905_v39 }
 0x510   : > { %v1027_v46 = vpop.permute.xlu1 %1026 }
 0x511   : > { %v1032_v48 = vsel %vm800_vm3, %v1027_v46, 0 }
 0x514   : > { %v1022_v40 = vpop.xlane.xlu0 %1021 }
 0x515   : > { %1747 = vrcp.f32 %v1022_v40 }
 0x518   : > { %v911_v41 = vpop.permute.xlu0 %910 }
 0x519   : > { %v916_v42 = vsel %vm800_vm3, %v911_v41, 0 }
 0x51a   : > { %v1746_v43 = vpop.eup %1745  ;;  %1551 = vmatpush3.bf16.msra.mxu0 %v916_v42 }
 0x51b   : > { %1562 = vmatprep.subr.bf16.mxu0 %v2080_v9  ;;  %v907_v45 = vmul.f32 %v1746_v43, %v1738_v26 }
 0x51d   : > { %v908_v47 = vpack.c.bf16 %v907_v45, %v907_v45 }
 0x51f   : > { %1553 = vmatmul.mubr.msk.bf16.vlgmr.msra.gmra.mxu0 %vm738_vm2, %v908_v47 }
 0x520   : > { %1563 = vmatpush3.bf16.msra.mxu0 %v1032_v48  ;;  %1564 = vmatprep.mubr.msk.bf16.mxu0 %vm2081_vm1, %v2080_v9 }
 0x521   : > { %1574 = vmatprep.subr.bf16.mxu0 %v2080_v9 }
 0x522   : > { %v1748_v44 = vpop.eup %1747 }
 0x523   : > { %v1024_v49 = vmul.f32 %v1748_v44, %v1740_v28 }
 0x525   : > { %v1025_v50 = vpack.c.bf16 %v1024_v49, %v1024_v49 }
 0x527   : > { %1565 = vmatmul.mubr.msk.bf16.vlgmr.msra.gmra.mxu0 %vm738_vm2, %v1025_v50 }
 0x528   : > { %1576 = vmatprep.mubr.msk.bf16.mxu0 %vm2081_vm1, %v2080_v9 }
 0x541   : > { %v1138_v51 = vpop.xlane.xlu1 %1137 }
 0x542   : > { %1749 = vrcp.f32 %v1138_v51 }
 0x545   : > { %v1143_v52 = vpop.permute.xlu1 %1142 }
 0x546   : > { %v1148_v53 = vsel %vm800_vm3, %v1143_v52, 0 }
 0x547   : > { %1575 = vmatpush3.bf16.msra.mxu0 %v1148_v53 }
 0x54f   : > { %v1750_v54 = vpop.eup %1749 }
 0x550   : > { %v1140_v55 = vmul.f32 %v1750_v54, %v1744_v37 }
 0x552   : > { %v1141_v56 = vpack.c.bf16 %v1140_v55, %v1140_v55 }
 0x554   : > { %1577 = vmatmul.mubr.msk.bf16.vlgmr.msra.gmra.mxu0 %vm738_vm2, %v1141_v56 }
 0x56c   : > { %v838_v57 = vpop.f32.mrf.mxu0 }
 0x56d   : > { %844 = vst.msk [vmem:[#allocation2] sm:$0xff] %vm738_vm2, %v838_v57 }
 0x56e   : > { %v1542_v58 = vpop.f32.mrf.mxu0 }
 0x570   : > { %v841_v59 = vpop.f32.mrf.mxu0 }
 0x572   : > { %v1543_v60 = vpop.f32.mrf.mxu0 }
 0x5df   : > { %v952_v61 = vpop.f32.mrf.mxu0 }
 0x5e0   : > { %959 = vrot.lane.b32.xlu0 %v952_v61, %s2085_s24  ;;  %s2470_s24 = scalar_lea.hbm %s2525_s11, %s1477_s5 }
 0x5e1   : > { %v1554_v62 = vpop.f32.mrf.mxu0 }
 0x5e3   : > { %v955_v63 = vpop.f32.mrf.mxu0 }
 0x5e5   : > { %v1555_v1 = vpop.f32.mrf.mxu0 }
 0x5e7   : > { %v1068_v2 = vpop.f32.mrf.mxu0 }
 0x5e8   : > { %1075 = vrot.lane.b32.xlu1 %v1068_v2, %s2086_s21  ;;  %s2088_s21 = smov [#allocation18]  }
 0x5e9   : > { %v1566_v3 = vpop.f32.mrf.mxu0  ;;  %s1991_s14 = sshll.u32 %s2088_s21, 4  ;;  %s1992_s14 = int_to_ptr.vmem [resolvable:$false] %s1991_s14 }
 0x5ea   : > { %s1993_s22 = scalar_lea.vmem %s1992_s14, 256  ;;  %p1994_p8 = scmp.lt.s32.totalorder %s2472_s1, %s1992_s14 }
 0x5eb   : > { %v1071_v4 = vpop.f32.mrf.mxu0  ;;  %p1995_p6 = scmp.lt.s32.totalorder %s1993_s22, %s1987_s13 }
 0x5ed   : > { %v1567_v5 = vpop.f32.mrf.mxu0  ;;  %p1996_p3 = por %p1995_p6, %p1994_p8 }
 0x5ef   : > { %p1997_p4 = pnand %p1996_p3, %p1990_p5 }
 0x614   : > { %v1184_v8 = vpop.f32.mrf.mxu0 }
 0x615   : > { %1191 = vrot.lane.b32.xlu0 %v1184_v8, %s2087_s30 }
 0x616   : > { %v1578_v10 = vpop.f32.mrf.mxu0 }
 0x618   : > { %v1187_v11 = vpop.f32.mrf.mxu0 }
 0x61a   : > { %v1579_v12 = vpop.f32.mrf.mxu0 }
 0x652   : > { %v960_v13 = vpop.permute.xlu0 %959 }
 0x653   : > { %963 = vst.msk [vmem:[#allocation2] sm:$0xff] %vm962_vm4, %v960_v13 }
 0x65a   : > { %v1076_v14 = vpop.permute.xlu1 %1075 }
 0x65b   : > { %1079 = vst.msk [vmem:[#allocation2] sm:$0xff] %vm1078_vm5, %v1076_v14 }
 0x687   : > { %v1192_v15 = vpop.permute.xlu0 %1191 }
 0x688   : > { %1195 = vst.msk [vmem:[#allocation2] sm:$0xff] %vm1194_vm6, %v1192_v15 }
 0x68f   : > { %v1196_v16 = vld [vmem:[#allocation2] sm:$0xff] }
 0x690   : > { %v1197_v9 = vpack.c.bf16 %v1196_v16, %v1196_v16 }
 0x692   : > { %1585 = vmatmul.mubr.msk.bf16.vlgmr.msra.gmra.mxu1 %vm512_vm0, %v1197_v9 }
 0x752   : > { %v1258_v18 = vpop.f32.mrf.mxu1 }
 0x753   : > { %v1259_v19 = vadd.f32 %v1472_v17, %v1258_v18 }
 0x754   : > { %v1586_v20 = vpop.f32.mrf.mxu1 }
 0x755   : > { %v1264_v21 = vadd.f32 %v1259_v19, %v2364_v0 }
 0x756   : > { %v1261_v22 = vpop.f32.mrf.mxu1 }
 0x757   : > { %1265 = vst.msk [vmem:[%s507_s6] sm:$0xff] %vm512_vm0, %v1264_v21 }
 0x758   : > { %v1587_v23 = vpop.f32.mrf.mxu1 }
 0x759   : > { %2000 = shalt.err (!%p1997_p4)
}
 0x75a   : > { %s2001_s28 = scalar_lea.hbm %s2470_s24, 128  ;;  %s2005_s30 = scalar_lea.hbm %s2525_s11, 256 }
 0x75b   : > { %p2002_p1 = scmp.ne.s32.totalorder %s2470_s24, %s2001_s28  ;;  %p2006_p9 = scmp.lt.s32.totalorder %s2470_s24, %s2525_s11 }
 0x75c   : > { %p2007_p11 = scmp.lt.s32.totalorder %s2005_s30, %s2001_s28 }
 0x75d   : > { %p2003_p0 = pnand %p2002_p1, %p2561_p13 }
 0x75e   : > { %p2008_p10 = por %p2007_p11, %p2006_p9 }
 0x75f   : > { %p2004_p2 = pneg %p2003_p0 }
 0x761   : > { %p2009_p12 = pnand %p2008_p10, %p2004_p2 }
 0x763   : > { %2012 = shalt.err (!%p2009_p12)
}
 0x764   : > { %1622 = dma.vmem_to_hbm [thread:$0]  (%p2561_p13), %s2472_s1, 128, %s2470_s24, %s1267_s23  }
 0x765 PF: > { %s1292_s5 = sand.u32 1, %s2055_s17   ;;  %p2562_p7 = scmp.ne.s32.totalorder %s2549_s29, 0 }
 0x766   : > { %p2563_p5 = scmp.ge.s32.totalorder %s2067_s20, 2  ;;  %s1293_s6 = scalar_lea.sflag [#allocation5], %s1292_s5 }
 0x768   : > { %p1654_p8 = pnand %p2563_p5, %p2562_p7 }
 0x76a   : > { %p1655_p6 = pneg %p1654_p8 }
 0x76c   : > { %2050 = dma.done.wait (%p1655_p6), %s1293_s6, 128  }
 0x76d   : > { %2052 = vsyncadd (%p1655_p6), %s1293_s6, 4294967168  ;;  %p28_p3 = scmp.ge.s32.totalorder %s2275_s27, 4   ;;  %s2564_s17 = smov %s2059_s18 }
 0x76e   : > { %s2565_s18 = smov %s2063_s19  ;;  %s2566_s19 = smov %s2286_s26 }
 0x76f   : > { %s2567_s20 = smov %s2275_s27  ;;  %30 = sbr.rel (!%p28_p3) target bundleno = 16 (0x10), region = 141 }
 0x774   :  { %1298 = vsyncpa [#allocation4], 1 }
 0x775   :  { %1300 = vsyncpa [#allocation4 + $0x1], 1 }
 0x776   :  { %1301 = vsyncpa [#allocation7], 1 }
 0x777   :  { %1302 = vsyncpa [#allocation10], 1 }
 0x778   :  { %1303 = vsyncpa [#allocation13], 1 }
 0x779   :  { %1304 = vsyncpa [#allocation16], 1 }
 0x77a   :  { %1305 = vsyncpa [#allocation5], 1 }
 0x77b   :  { %1307 = vsyncpa [#allocation5 + $0x1], 1 }

</bundles_post_ra>
